<compile_context>
chip_gen: v7x
topology: tpu7x:2x2x1
jax: 0.10.0
libtpu: 0.0.40
codegen_flags: <defaults>
</compile_context>

<pallas_src>
import jax
import jax.numpy as jnp
from jax.experimental import pallas as pl
from jax.experimental.pallas import tpu as pltpu

BN_EPS = 1e-5


def _round_up(n, m):
    return ((n + m - 1) // m) * m


def _deep_mlp_kernel(x_ref, w1_ref, b1_ref, w2_ref, b2_ref, w3_ref, b3_ref, o_ref):
    """One batch tile: x (TB, D_in) -> o (1, TB) lane-dense row."""
    x = x_ref[...]

    # Layer 1: Linear (BN folded in) + ReLU.  f32 accumulation on the MXU.
    h = jnp.dot(x, w1_ref[...], preferred_element_type=jnp.float32) + b1_ref[...]
    h = jnp.maximum(h, 0.0)

    # Layer 2: Linear (BN folded in) + ReLU.
    h = jnp.dot(h.astype(w2_ref.dtype), w2_ref[...],
                preferred_element_type=jnp.float32) + b2_ref[...]
    h = jnp.maximum(h, 0.0)

    # Output head (hidden2 -> 1): VPU multiply + cross-lane reduction instead
    # of a 1-column MXU matmul; result stored as a lane-dense (1, TB) row.
    o = jnp.sum(h * w3_ref[...].astype(jnp.float32), axis=-1) + b3_ref[0, 0]
    o_ref[...] = o[None, :].astype(o_ref.dtype)


def fold_params(params, mxu_dtype=jnp.float32):
    """Fold eval-mode BatchNorm into the preceding Linear (wrapper time)."""
    s1 = params["g1"] * jax.lax.rsqrt(params["v1"] + BN_EPS)                 # (1, H1)
    w1 = (params["w1"] * s1).astype(mxu_dtype)                               # (D_in, H1)
    b1 = ((params["b1"] - params["m1"]) * s1 + params["bt1"]).astype(jnp.float32)
    s2 = params["g2"] * jax.lax.rsqrt(params["v2"] + BN_EPS)                 # (1, H2)
    w2 = (params["w2"] * s2).astype(mxu_dtype)                               # (H1, H2)
    b2 = ((params["b2"] - params["m2"]) * s2 + params["bt2"]).astype(jnp.float32)
    w3 = params["w3"].reshape(1, -1).astype(mxu_dtype)                       # (1, H2) row
    b3 = params["b3"].reshape(1, 1).astype(jnp.float32)                      # SMEM scalar
    return w1, b1, w2, b2, w3, b3


def deep_mlp_forward(x, params, *, block_b=512, mxu_dtype=jnp.float32):
    """x: (B, D_in) float32 -> (B, 1) float32 (eval-mode DeepMLP forward)."""
    B, d_in = x.shape
    w1, b1, w2, b2, w3, b3 = fold_params(params, mxu_dtype)
    h1 = w1.shape[1]
    h2 = w2.shape[1]

    # Batch tile: sublane-aligned (multiple of 8); ideally a multiple of 128
    # for a lane-dense output row.  512 rows keeps the double-buffered x tile
    # + resident weights well under the 32 MiB scoped VMEM budget.
    tb = min(block_b, _round_up(B, 8))
    num_tiles = pl.cdiv(B, tb)
    b_pad = num_tiles * tb

    x = x.astype(mxu_dtype)
    if b_pad != B:
        x = jnp.concatenate([x, jnp.zeros((b_pad - B, d_in), x.dtype)], axis=0)

    def resident(shape):
        # Whole array, constant index_map -> DMA'd once, stays VMEM-resident.
        return pl.BlockSpec(shape, lambda i: (0, 0))

    out = pl.pallas_call(
        _deep_mlp_kernel,
        grid=(num_tiles,),
        out_shape=jax.ShapeDtypeStruct((num_tiles, 1, tb), jnp.float32),
        in_specs=[
            pl.BlockSpec((tb, d_in), lambda i: (i, 0)),          # x: streamed batch tile
            resident((d_in, h1)),                                 # w1 (BN folded)
            resident((1, h1)),                                    # b1 (BN folded)
            resident((h1, h2)),                                   # w2 (BN folded)
            resident((1, h2)),                                    # b2 (BN folded)
            resident((1, h2)),                                    # w3 row
            pl.BlockSpec(memory_space=pltpu.MemorySpace.SMEM),    # b3 scalar
        ],
        out_specs=pl.BlockSpec((None, 1, tb), lambda i: (i, 0, 0)),
        compiler_params=pltpu.CompilerParams(
            dimension_semantics=("parallel",),      # shard batch tiles across TCs (v7x)
            vmem_limit_bytes=32 * 1024 * 1024,      # safe on v5e/v6e/v7x scoped budgets
        ),
    )(x, w1, b1, w2, b2, w3, b3)

    return out.reshape(b_pad, 1)[:B]


def init_params(key, input_dim, hidden_dims=(256, 64)):
    """Deterministic synthetic parameters matching the PyTorch module's shapes."""
    dims = [input_dim, *hidden_dims]
    keys = jax.random.split(key, 6 * len(hidden_dims) + 2)
    ki = iter(keys)
    p = {}
    for i, (d_in, d_out) in enumerate(zip(dims[:-1], dims[1:]), start=1):
        bound = 1.0 / float(d_in) ** 0.5
        p[f"w{i}"] = jax.random.uniform(next(ki), (d_in, d_out), jnp.float32, -bound, bound)
        p[f"b{i}"] = jax.random.uniform(next(ki), (1, d_out), jnp.float32, -bound, bound)
        # BatchNorm1d affine params + (non-trivial) running stats, eval mode.
        p[f"g{i}"] = jax.random.uniform(next(ki), (1, d_out), jnp.float32, 0.5, 1.5)
        p[f"bt{i}"] = 0.1 * jax.random.normal(next(ki), (1, d_out), jnp.float32)
        p[f"m{i}"] = 0.1 * jax.random.normal(next(ki), (1, d_out), jnp.float32)
        p[f"v{i}"] = jax.random.uniform(next(ki), (1, d_out), jnp.float32, 0.5, 1.5)
    d_in = dims[-1]
    bound = 1.0 / float(d_in) ** 0.5
    p["w3"] = jax.random.uniform(next(ki), (d_in, 1), jnp.float32, -bound, bound)
    p["b3"] = jax.random.uniform(next(ki), (1, 1), jnp.float32, -bound, bound)
    return p


def reference_forward(x, p):
    """Plain-JAX reference implementing the original (unfused) eval-mode module."""
    h = x @ p["w1"] + p["b1"]
    h = (h - p["m1"]) * jax.lax.rsqrt(p["v1"] + BN_EPS) * p["g1"] + p["bt1"]
    h = jnp.maximum(h, 0.0)
    h = h @ p["w2"] + p["b2"]
    h = (h - p["m2"]) * jax.lax.rsqrt(p["v2"] + BN_EPS) * p["g2"] + p["bt2"]
    h = jnp.maximum(h, 0.0)
    return h @ p["w3"] + p["b3"]


def folded_reference(x, params, mxu_dtype):
    """Reference that mirrors the kernel's BN fold + operand dtype exactly."""
    w1, b1, w2, b2, w3, b3 = fold_params(params, mxu_dtype)
    f32 = jnp.float32
    h = x.astype(mxu_dtype).astype(f32) @ w1.astype(f32) + b1
    h = jnp.maximum(h, 0.0)
    h = h.astype(mxu_dtype).astype(f32) @ w2.astype(f32) + b2
    h = jnp.maximum(h, 0.0)
    return jnp.sum(h * w3.astype(f32), axis=-1, keepdims=True) + b3


if __name__ == "__main__":
    key = jax.random.PRNGKey(0)
    k_x, k_p = jax.random.split(key)

    batch, input_dim = 8, 32  # small demo shapes; hidden dims follow module default [256, 64]
    x = jax.random.normal(k_x, (batch, input_dim), dtype=jnp.float32)
    params = init_params(k_p, input_dim, hidden_dims=(256, 64))

    # f32 MXU operands: matches original module (eval-mode) semantics.
    out = jax.block_until_ready(deep_mlp_forward(x, params, mxu_dtype=jnp.float32))
    ref = reference_forward(x, params)
    assert out.shape == (batch, 1)
    assert jnp.allclose(out, ref, atol=1e-4, rtol=1e-4)

    # bf16 MXU operands (f32 accumulation / f32 epilogue): v6e/v7x fast path.
    out_bf16 = jax.block_until_ready(
        deep_mlp_forward(x, params, mxu_dtype=jnp.bfloat16))
    ref_bf16 = folded_reference(x, params, jnp.bfloat16)
    assert out_bf16.shape == (batch, 1)
    assert jnp.allclose(out_bf16, ref_bf16, atol=2e-3, rtol=2e-3)

    print("KERNEL_OK")
</pallas_src>

<mosaic_0001>
module attributes {stable_mosaic.version = 11 : i64} {
  func.func @_deep_mlp_kernel(%arg0: i32, %arg1: memref<8x32xf32, #tpu.memory_space<vmem>>, %arg2: memref<32x256xf32, #tpu.memory_space<vmem>>, %arg3: memref<1x256xf32, #tpu.memory_space<vmem>>, %arg4: memref<256x64xf32, #tpu.memory_space<vmem>>, %arg5: memref<1x64xf32, #tpu.memory_space<vmem>>, %arg6: memref<1x64xf32, #tpu.memory_space<vmem>>, %arg7: memref<1x1xf32, #tpu.memory_space<smem>>, %arg8: memref<1x1x8xf32, #tpu.memory_space<vmem>>) attributes {dimension_semantics = [#tpu.dimension_semantics<parallel>], iteration_bounds = array<i64: 1>, scalar_prefetch = 0 : i64, scratch_operands = 0 : i64, tpu.core_type = #tpu.core_type<tc>, window_params = [{transform_indices = @transform_0, window_bounds = array<i64: 8, 32>}, {pipeline_mode = #tpu.pipeline_mode<synchronous>, transform_indices = @transform_1, window_bounds = array<i64: 32, 256>}, {pipeline_mode = #tpu.pipeline_mode<synchronous>, transform_indices = @transform_2, window_bounds = array<i64: 1, 256>}, {pipeline_mode = #tpu.pipeline_mode<synchronous>, transform_indices = @transform_3, window_bounds = array<i64: 256, 64>}, {pipeline_mode = #tpu.pipeline_mode<synchronous>, transform_indices = @transform_4, window_bounds = array<i64: 1, 64>}, {pipeline_mode = #tpu.pipeline_mode<synchronous>, transform_indices = @transform_5, window_bounds = array<i64: 1, 64>}, {transform_indices = @transform_6, window_bounds = array<i64: 1, 1>}, {transform_indices = @transform_7, window_bounds = array<i64: 1, 1, 8>}]} {
    %c0 = arith.constant 0 : index
    %c0_0 = arith.constant 0 : index
    %0 = vector.load %arg1[%c0, %c0_0] : memref<8x32xf32, #tpu.memory_space<vmem>>, vector<8x32xf32>
    %c0_1 = arith.constant 0 : index
    %c0_2 = arith.constant 0 : index
    %1 = vector.load %arg2[%c0_1, %c0_2] : memref<32x256xf32, #tpu.memory_space<vmem>>, vector<32x256xf32>
    %cst = arith.constant dense<0.000000e+00> : vector<8x256xf32>
    %2 = tpu.matmul %0, %1, %cst {dimension_numbers = #tpu.dot_dimension_numbers<[1], [0], [0], [1], [0, 0, 1, 1], [], []>} : vector<8x32xf32>, vector<32x256xf32>, vector<8x256xf32> -> vector<8x256xf32>
    %c0_3 = arith.constant 0 : index
    %c0_4 = arith.constant 0 : index
    %3 = vector.load %arg3[%c0_3, %c0_4] : memref<1x256xf32, #tpu.memory_space<vmem>>, vector<1x256xf32>
    %4 = vector.broadcast %3 : vector<1x256xf32> to vector<8x256xf32>
    %5 = arith.addf %2, %4 : vector<8x256xf32>
    %cst_5 = arith.constant 0.000000e+00 : f32
    %6 = vector.broadcast %cst_5 : f32 to vector<8x256xf32>
    %7 = arith.maximumf %5, %6 : vector<8x256xf32>
    %c0_6 = arith.constant 0 : index
    %c0_7 = arith.constant 0 : index
    %8 = vector.load %arg4[%c0_6, %c0_7] : memref<256x64xf32, #tpu.memory_space<vmem>>, vector<256x64xf32>
    %cst_8 = arith.constant dense<0.000000e+00> : vector<8x64xf32>
    %9 = tpu.matmul %7, %8, %cst_8 {dimension_numbers = #tpu.dot_dimension_numbers<[1], [0], [0], [1], [0, 0, 1, 1], [], []>} : vector<8x256xf32>, vector<256x64xf32>, vector<8x64xf32> -> vector<8x64xf32>
    %c0_9 = arith.constant 0 : index
    %c0_10 = arith.constant 0 : index
    %10 = vector.load %arg5[%c0_9, %c0_10] : memref<1x64xf32, #tpu.memory_space<vmem>>, vector<1x64xf32>
    %11 = vector.broadcast %10 : vector<1x64xf32> to vector<8x64xf32>
    %12 = arith.addf %9, %11 : vector<8x64xf32>
    %cst_11 = arith.constant 0.000000e+00 : f32
    %13 = vector.broadcast %cst_11 : f32 to vector<8x64xf32>
    %14 = arith.maximumf %12, %13 : vector<8x64xf32>
    %c0_12 = arith.constant 0 : index
    %c0_13 = arith.constant 0 : index
    %15 = vector.load %arg6[%c0_12, %c0_13] : memref<1x64xf32, #tpu.memory_space<vmem>>, vector<1x64xf32>
    %16 = vector.broadcast %15 : vector<1x64xf32> to vector<8x64xf32>
    %17 = arith.mulf %14, %16 : vector<8x64xf32>
    %cst_14 = arith.constant dense<0.000000e+00> : vector<8xf32>
    %18 = vector.multi_reduction <add>, %17, %cst_14 [1] : vector<8x64xf32> to vector<8xf32>
    %c0_15 = arith.constant 0 : index
    %c0_16 = arith.constant 0 : index
    %19 = memref.load %arg7[%c0_15, %c0_16] : memref<1x1xf32, #tpu.memory_space<smem>>
    %20 = vector.broadcast %19 : f32 to vector<8xf32>
    %21 = arith.addf %18, %20 : vector<8xf32>
    %22 = vector.shape_cast %21 : vector<8xf32> to vector<1x8xf32>
    %c0_17 = arith.constant 0 : index
    %c0_18 = arith.constant 0 : index
    %c0_19 = arith.constant 0 : index
    %23 = vector.load %arg8[%c0_17, %c0_18, %c0_19] : memref<1x1x8xf32, #tpu.memory_space<vmem>>, vector<1x1x8xf32>
    %24 = vector.shape_cast %23 : vector<1x1x8xf32> to vector<1x8xf32>
    %25 = vector.shape_cast %22 : vector<1x8xf32> to vector<1x1x8xf32>
    tpu.vector_store %arg8[%c0_17, %c0_18, %c0_19], %25 {strides = array<i32>} : memref<1x1x8xf32, #tpu.memory_space<vmem>>, vector<1x1x8xf32>,
    return
  }
  func.func @transform_0(%arg0: i32) -> (i32, i32) {
    %c0_i32 = arith.constant 0 : i32
    %c0_i32_0 = arith.constant 0 : i32
    return %arg0, %c0_i32 : i32, i32
  }
  func.func @transform_1(%arg0: i32) -> (i32, i32) {
    %c0_i32 = arith.constant 0 : i32
    %c0_i32_0 = arith.constant 0 : i32
    %c0_i32_1 = arith.constant 0 : i32
    return %c0_i32, %c0_i32_0 : i32, i32
  }
  func.func @transform_2(%arg0: i32) -> (i32, i32) {
    %c0_i32 = arith.constant 0 : i32
    %c0_i32_0 = arith.constant 0 : i32
    %c0_i32_1 = arith.constant 0 : i32
    return %c0_i32, %c0_i32_0 : i32, i32
  }
  func.func @transform_3(%arg0: i32) -> (i32, i32) {
    %c0_i32 = arith.constant 0 : i32
    %c0_i32_0 = arith.constant 0 : i32
    %c0_i32_1 = arith.constant 0 : i32
    return %c0_i32, %c0_i32_0 : i32, i32
  }
  func.func @transform_4(%arg0: i32) -> (i32, i32) {
    %c0_i32 = arith.constant 0 : i32
    %c0_i32_0 = arith.constant 0 : i32
    %c0_i32_1 = arith.constant 0 : i32
    return %c0_i32, %c0_i32_0 : i32, i32
  }
  func.func @transform_5(%arg0: i32) -> (i32, i32) {
    %c0_i32 = arith.constant 0 : i32
    %c0_i32_0 = arith.constant 0 : i32
    %c0_i32_1 = arith.constant 0 : i32
    return %c0_i32, %c0_i32_0 : i32, i32
  }
  func.func @transform_6(%arg0: i32) -> (i32, i32) {
    %c0_i32 = arith.constant 0 : i32
    %c0_i32_0 = arith.constant 0 : i32
    %c0_i32_1 = arith.constant 0 : i32
    return %c0_i32, %c0_i32_0 : i32, i32
  }
  func.func @transform_7(%arg0: i32) -> (i32, i32, i32) {
    %c0_i32 = arith.constant 0 : i32
    %c0_i32_0 = arith.constant 0 : i32
    %c0_i32_1 = arith.constant 0 : i32
    return %arg0, %c0_i32, %c0_i32_0 : i32, i32, i32
  }
}

</mosaic_0001>

<bundles_post_ra>
// kernel: tpu_custom_call.1
= control target key start
LH: loop header
LB: loop body
LE: loop exit
PB: predicated region body
PF: predicated region fallthrough
CT: control target
= control target key end

     0   :  { %v379_v7 = vmov 0.0   ;;  %vm49_vm0 = vcmask 261120   ;;  %s568_s0 = inlined_call_operand.vmem [shape: f32[8,32], index: 0, kind: input, shape index: {}]   ;;  %s569_s1 = inlined_call_operand.vmem [shape: f32[32,256], index: 1, kind: input, shape index: {}]   ;;  %s570_s2 = inlined_call_operand.vmem [shape: f32[1,256], index: 2, kind: input, shape index: {}]   ;;  %s571_s3 = inlined_call_operand.vmem [shape: f32[256,64], index: 3, kind: input, shape index: {}]   ;;  %s572_s4 = inlined_call_operand.vmem [shape: f32[1,64], index: 4, kind: input, shape index: {}]   ;;  %s573_s5 = inlined_call_operand.vmem [shape: f32[1,64], index: 5, kind: input, shape index: {}]   ;;  %s574_s6 = inlined_call_operand.<no memory space> [shape: f32[1,1], index: 6, kind: input, shape index: {}]   ;;  %s575_s7 = inlined_call_operand.hbm [shape: f32[1,1,8], index: 7, kind: output, shape index: {}]  }
   0x1   :  { %v30_v0 = vld [vmem:[%s569_s1 + $0x8] sm:$0xff]  ;;  %v32_v1 = vld [vmem:[%s569_s1 + $0x18] sm:$0xff]  ;;  %v29_v2 = vld [vmem:[%s569_s1] sm:$0xff]  ;;  %117 = vmatprep.mubr.f32.mxu0 %v379_v7 }
   0x2   :  { %v313_v3 = vpack.c.bf16 %v32_v1, %v30_v0  ;;  %v31_v4 = vld [vmem:[%s569_s1 + $0x10] sm:$0xff]  ;;  %v34_v5 = vld [vmem:[%s569_s1 + $0x28] sm:$0xff]  ;;  %v36_v6 = vld [vmem:[%s569_s1 + $0x38] sm:$0xff] }
   0x3   :  { %v315_v8 = vpack.c.bf16 %v31_v4, %v29_v2  ;;  %v317_v9 = vpack.c.bf16 %v36_v6, %v34_v5  ;;  %v33_v10 = vld [vmem:[%s569_s1 + $0x20] sm:$0xff]  ;;  %v35_v11 = vld [vmem:[%s569_s1 + $0x30] sm:$0xff]  ;;  %v143_v13 = vld [vmem:[%s571_s3 + $0x88] sm:$0xff] }
   0x4   :  { %314 = vmatprep.subr.bf16.mxu0 %v313_v3  ;;  %v142_v12 = vld [vmem:[%s571_s3 + $0x80] sm:$0xff]  ;;  %v319_v15 = vpack.c.bf16 %v35_v11, %v33_v10  ;;  %v127_v17 = vld [vmem:[%s571_s3 + $0x8] sm:$0xff]  ;;  %v144_v18 = vld [vmem:[%s571_s3 + $0x90] sm:$0xff] }
   0x5   :  { %v126_v14 = vld [vmem:[%s571_s3] sm:$0xff]  ;;  %316 = vmatpush1.bf16.msra.mxu0 %v315_v8  ;;  %v321_v16 = vpack.c.bf16 %v143_v13, %v142_v12  ;;  %v145_v19 = vld [vmem:[%s571_s3 + $0x98] sm:$0xff]  ;;  %v128_v22 = vld [vmem:[%s571_s3 + $0x10] sm:$0xff] }
   0x6   :  { %318 = vmatprep.subr.bf16.mxu0 %v317_v9  ;;  %v323_v20 = vpack.c.bf16 %v127_v17, %v126_v14  ;;  %v325_v21 = vpack.c.bf16 %v145_v19, %v144_v18  ;;  %v129_v23 = vld [vmem:[%s571_s3 + $0x18] sm:$0xff]  ;;  %v146_v24 = vld [vmem:[%s571_s3 + $0xa0] sm:$0xff]  ;;  %v147_v25 = vld [vmem:[%s571_s3 + $0xa8] sm:$0xff] }
   0x7   :  { %322 = vmatprep.subr.bf16.mxu1 %v321_v16  ;;  %v327_v26 = vpack.c.bf16 %v129_v23, %v128_v22  ;;  %v28_v27 = vld [vmem:[%s568_s0] sm:$0xff]  ;;  %v329_v28 = vpack.c.bf16 %v147_v25, %v146_v24  ;;  %v131_v30 = vld [vmem:[%s571_s3 + $0x28] sm:$0xff]  ;;  %v148_v31 = vld [vmem:[%s571_s3 + $0xb0] sm:$0xff] }
   0x8   :  { %324 = vmatpush3.bf16.msra.mxu1 %v323_v20  ;;  %v130_v29 = vld [vmem:[%s571_s3 + $0x20] sm:$0xff]  ;;  %v149_v32 = vld [vmem:[%s571_s3 + $0xb8] sm:$0xff]  ;;  %v132_v35 = vld [vmem:[%s571_s3 + $0x30] sm:$0xff] }
   0x9   :  { %320 = vmatpush1.bf16.msra.mxu0 %v319_v15  ;;  %326 = vmatprep.subr.bf16.mxu1 %v325_v21  ;;  %v331_v33 = vpack.c.bf16 %v131_v30, %v130_v29  ;;  %v333_v34 = vpack.c.bf16 %v149_v32, %v148_v31  ;;  %v133_v36 = vld [vmem:[%s571_s3 + $0x38] sm:$0xff] }
   0xc   :  { %275 = vmatmul.mubr.msk.f32.vlgmr.msra.gmra.mrb[0].mxu0 %vm49_vm0, %v28_v27  ;;  %328 = vmatpush3.bf16.msra.mxu1 %v327_v26 }
   0xd   :  { %330 = vmatprep.subr.bf16.mxu1 %v329_v28 }
   0xe   :  { %13 = vsyncpa [#allocation4], 0  ;;  %v150_v37 = vld [vmem:[%s571_s3 + $0xc0] sm:$0xff]  ;;  %v151_v38 = vld [vmem:[%s571_s3 + $0xc8] sm:$0xff]  ;;  %v335_v39 = vpack.c.bf16 %v133_v36, %v132_v35  ;;  %v39_v62 = vlaneseq  ;;  %vm244_vm1 = vcmask 523264   ;;  %v249_v21 = vstv %s574_s6 }
   0xf   :  { %v337_v40 = vpack.c.bf16 %v151_v38, %v150_v37  ;;  %v134_v41 = vld [vmem:[%s571_s3 + $0x40] sm:$0xff]  ;;  %v135_v42 = vld [vmem:[%s571_s3 + $0x48] sm:$0xff]  ;;  %v152_v43 = vld [vmem:[%s571_s3 + $0xd0] sm:$0xff]  ;;  %vm259_vm2 = vcmask 57344  }
  0x10   :  { %332 = vmatpush3.bf16.msra.mxu1 %v331_v33  ;;  %v153_v44 = vld [vmem:[%s571_s3 + $0xd8] sm:$0xff]  ;;  %v339_v45 = vpack.c.bf16 %v135_v42, %v134_v41  ;;  %v136_v47 = vld [vmem:[%s571_s3 + $0x50] sm:$0xff]  ;;  %v154_v49 = vld [vmem:[%s571_s3 + $0xe0] sm:$0xff]  ;;  %v40_v63 = vshrl.u32 %v39_v62, 7  ;;  %v253_v20 = vand.u32 127, %v39_v62 }
  0x11   :  { %334 = vmatprep.subr.bf16.mxu1 %v333_v34  ;;  %v341_v46 = vpack.c.bf16 %v153_v44, %v152_v43  ;;  %v137_v48 = vld [vmem:[%s571_s3 + $0x58] sm:$0xff]  ;;  %v155_v50 = vld [vmem:[%s571_s3 + $0xe8] sm:$0xff]  ;;  %v138_v53 = vld [vmem:[%s571_s3 + $0x60] sm:$0xff] }
  0x12   :  { %v343_v51 = vpack.c.bf16 %v137_v48, %v136_v47  ;;  %v345_v52 = vpack.c.bf16 %v155_v50, %v154_v49  ;;  %v139_v54 = vld [vmem:[%s571_s3 + $0x68] sm:$0xff]  ;;  %v156_v56 = vld [vmem:[%s571_s3 + $0xf0] sm:$0xff]  ;;  %v157_v57 = vld [vmem:[%s571_s3 + $0xf8] sm:$0xff]  ;;  %v41_v0 = vsub.s32 0, %v40_v63  ;;  %v45_v2 = vsub.s32 1, %v40_v63 }
  0x13   :  { %v347_v55 = vpack.c.bf16 %v139_v54, %v138_v53  ;;  %v349_v58 = vpack.c.bf16 %v157_v57, %v156_v56  ;;  %v140_v59 = vld [vmem:[%s571_s3 + $0x70] sm:$0xff]  ;;  %v141_v60 = vld [vmem:[%s571_s3 + $0x78] sm:$0xff]  ;;  %v37_v1 = vld [vmem:[%s570_s2] sm:$0x3]  ;;  %v256_v22 = vsub.s32 %v253_v20, %v40_v63 }
  0x14   :  { %336 = vmatpush3.bf16.msra.mxu1 %v335_v39  ;;  %v351_v61 = vpack.c.bf16 %v141_v60, %v140_v59  ;;  %v42_v3 = vrot.slane %v37_v1, %v41_v0  ;;  %v46_v4 = vrot.slane %v37_v1, %v45_v2  ;;  %v276_v12 = vld [vmem:[%s572_s4] ss:$0 sm:$0xff]  ;;  %s380_s4 = smov [#allocation3]  }
  0x15   :  { %338 = vmatprep.subr.bf16.mxu1 %v337_v40  ;;  %v277_v16 = vld [vmem:[%s573_s5] ss:$0 sm:$0xff]  ;;  %s267_s15 = sshll.u32 %s380_s4, 4  ;;  %s268_s15 = int_to_ptr.vmem [resolvable:$true] %s267_s15 }
  0x16   :  { %s355_s5 = scalar_lea.vmem %s268_s15, 16  ;;  %s359_s16 = scalar_lea.vmem %s268_s15, 32 }
  0x17   :  { %p356_p0 = scmp.ne.s32.totalorder %s268_s15, %s355_s5  ;;  %p360_p1 = scmp.lt.s32.totalorder %s268_s15, %s268_s15 }
  0x18   :  { %340 = vmatpush3.bf16.msra.mxu1 %v339_v45  ;;  %p361_p2 = scmp.lt.s32.totalorder %s359_s16, %s355_s5 }
  0x19   :  { %342 = vmatprep.subr.bf16.mxu1 %v341_v46 }
  0x1a   :  { %p362_p3 = por %p361_p2, %p360_p1 }
  0x1c   :  { %344 = vmatpush3.bf16.msra.mxu1 %v343_v51  ;;  %p363_p4 = pnand %p362_p3, %p356_p0 }
  0x1d   :  { %346 = vmatprep.subr.bf16.mxu1 %v345_v52 }
  0x20   :  { %348 = vmatpush3.bf16.msra.mxu1 %v347_v55 }
  0x21   :  { %350 = vmatprep.subr.bf16.mxu1 %v349_v58 }
  0x24   :  { %352 = vmatpush3.bf16.msra.mxu1 %v351_v61 }
  0xdf   :  { %v119_v5 = vpop.f32.mrb[0].mxu0 }
  0xe0   :  { %v120_v6 = vadd.f32 %v119_v5, %v42_v3  ;;  %v121_v7 = vpop.f32.mrb[1].mxu0 }
  0xe1   :  { %v122_v8 = vadd.f32 %v121_v7, %v46_v4 }
  0xe2   :  { %v124_v10 = vmax.f32 %v120_v6, 0.0 }
  0xe3   :  { %v125_v9 = vmax.f32 %v122_v8, 0.0 }
  0xe5   :  { %229 = vmatprep.mubr.f32.mxu1 %v125_v9 }
  0xe6   :  { %230 = vmatmul.mubr.f32.vlgmr.msra.gmra.mrb[0].mxu1 %v124_v10 }
 0x1b9   :  { %v310_v11 = vpop.f32.mrb[0].mxu1 }
 0x1ba   :  { %v311_v13 = vpop.f32.mrb[1].mxu1 }
 0x1bb   :  { %v312_v14 = vadd.f32 %v311_v13, %v310_v11 }
 0x1bd   :  { %v232_v15 = vadd.f32 %v312_v14, %v276_v12 }
 0x1bf   :  { %v235_v17 = vmax.f32 %v232_v15, 0.0 }
 0x1c1   :  { %v243_v18 = vmul.f32 %v277_v16, %v235_v17 }
 0x1c3   :  { %v245_v19 = vsel %vm244_vm1, %v243_v18, 0.0 }
 0x1c4   :  { %246 = vadd.xlane.f32.xlu0 %v245_v19 }
 0x251   :  { %v247_v23 = vpop.xlane.xlu0 %246 }
 0x252   :  { %v250_v24 = vadd.f32 %v249_v21, %v247_v23 }
 0x254   :  { %v257_v25 = vrot.slane %v250_v24, %v256_v22 }
 0x256   :  { %260 = vst.msk [vmem:[#allocation3] sm:$0x1] %vm259_vm2, %v257_v25 }
 0x257   :  { %366 = shalt.err (!%p363_p4)
}
 0x258   :  { %s367_s6 = scalar_lea.hbm %s575_s7, 16 }
 0x259   :  { %p368_p5 = scmp.ne.s32.totalorder %s575_s7, %s367_s6  ;;  %p371_p6 = scmp.lt.u32.totalorder %s367_s6, %s575_s7 }
 0x25b   :  { %p373_p7 = pnand %p371_p6, %p368_p5 }
 0x25d   :  { %376 = shalt.err (!%p373_p7)
}
 0x25e   :  { %270 = dma.vmem_to_hbm [thread:$0]  %s268_s15, 16, %s575_s7, [#allocation4]  }
 0x25f   :  { %377 = dma.done.wait [#allocation4], 16  }
 0x260   :  { %378 = vsyncadd [#allocation4], 4294967280 }
 0x261   :  { %274 = vsyncpa [#allocation4], 1 }

</bundles_post_ra>
